<compile_context>
chip_gen: v7x
topology: tpu7x:2x2x1
jax: 0.10.0
libtpu: 0.0.40
codegen_flags: <defaults>
</compile_context>

<pallas_src>
import functools

import jax
import jax.numpy as jnp
from jax.experimental import pallas as pl
from jax.experimental.pallas import tpu as pltpu


def _round_up(x, m):
    return (x + m - 1) // m * m


def _tpu_generation():
    """Best-effort TPU generation (5/6/7); defaults to 6 if unknown."""
    try:
        kind = jax.devices()[0].device_kind.lower()
    except Exception:
        return 6
    for g in (7, 6, 5, 4):
        if "v{}".format(g) in kind:
            return g
    return 6


def _vmem_budget_and_limit(gen):
    """x-stream VMEM budget and scoped-VMEM limit, per generation."""
    # Review numbers: ~12 MiB (v5e), ~22 MiB (v6e), ~18 MiB (v7x: only
    # 64 MiB physical VMEM, so leave headroom).
    budgets = {5: 12 << 20, 6: 22 << 20, 7: 18 << 20}
    x_budget = budgets.get(gen, 16 << 20)
    try:
        phys = int(pltpu.get_tpu_info().vmem_capacity_bytes)
    except Exception:
        phys = (64 << 20) if gen >= 7 else (128 << 20)
    vmem_limit = int(min(max(32 << 20, x_budget + (16 << 20)), phys * 3 // 4))
    return x_budget, vmem_limit


def _pick_tile_n(n_pad, c, x_budget_bytes, buffers=3):
    """Largest 128-multiple tile dividing n_pad whose multi-buffered f32
    x working set fits the generation-aware VMEM budget."""
    for cand in (4096, 2048, 1024, 512, 256, 128):
        if n_pad % cand == 0 and buffers * c * cand * 4 <= x_budget_bytes:
            return cand
    return 128


def _make_x_spec(c, tile_n, tiles_per_chunk, deep):
    idx = lambda bi, ci, ni: (bi, 0, ci * tiles_per_chunk + ni)
    if deep and hasattr(pl, "Buffered"):
        try:
            # 3-deep input pipelining recovers DMA latency/jitter when the
            # per-tile compute is tiny (small C).
            return pl.BlockSpec((1, c, tile_n), idx, pipeline_mode=pl.Buffered(3))
        except TypeError:
            pass
    return pl.BlockSpec((1, c, tile_n), idx)


def sem_kernel(x_ref, w_ref, m_ref, l_ref, acc_ref, *,
               cf_p, n_chunks, tiles_per_chunk, valid_in_last_tile,
               needs_mask, exp_bf16):
    """One (batch, N-chunk, N-tile) grid step.

    x_ref  : (1, C, tile_n)        f32   input spatial slab (cast in-kernel)
    w_ref  : (cf_p+ca_p, C)        bf16  stacked [w_feat ; w_atten]
    m_ref  : (1, 1, ca_p, 1)       f32   per-chunk running softmax max
    l_ref  : (1, 1, ca_p, 1)       f32   per-chunk running denominator
    acc_ref: (1, 1, ca_p, cf_p)    f32   per-chunk unnormalized numerator
    (m/l/acc are outputs used as resident accumulators across the inner
     "arbitrary" tile axis; normalization/bias happen in the JAX epilogue.)
    """
    ci = pl.program_id(1)
    ni = pl.program_id(2)

    @pl.when(ni == 0)
    def _init():
        m_ref[...] = jnp.full_like(m_ref, -jnp.inf)
        l_ref[...] = jnp.zeros_like(l_ref)
        acc_ref[...] = jnp.zeros_like(acc_ref)

    # Single stacked channel matmul (both 1x1 convs) on the MXU, f32 accum.
    # x streams from HBM in f32; the bf16 cast is free VPU work under DMA
    # slack (no separate wrapper-side convert/pad HBM pass).
    xb = x_ref[0].astype(jnp.bfloat16)                      # (C, tile_n)
    y = jnp.dot(w_ref[...], xb, preferred_element_type=jnp.float32)
    feat = y[:cf_p, :].astype(jnp.bfloat16)                 # (cf_p, tile_n)
    s = y[cf_p:, :]                                         # (ca_p, tile_n)

    def update(s_logits):
        m_prev = m_ref[0, 0]                                # (ca_p, 1)
        m_new = jnp.maximum(m_prev, jnp.max(s_logits, axis=-1, keepdims=True))
        alpha = jnp.exp(m_prev - m_new)                     # (ca_p, 1) f32
        z = s_logits - m_new
        if exp_bf16:
            e = jnp.exp(z.astype(jnp.bfloat16))             # bf16 EUP (v6e/v7x)
        else:
            e = jnp.exp(z).astype(jnp.bfloat16)             # f32 EUP (v5e)
        l_ref[0, 0] = alpha * l_ref[0, 0] + jnp.sum(
            e.astype(jnp.float32), axis=-1, keepdims=True)
        # acc += e . feat contracted on the spatial (lane) axis of BOTH
        # operands -- identical dot_general pattern to the canonical Pallas
        # flash-attention q.kT; Mosaic feeds the transposed operand to the
        # MXU (check with pl.lower_as_mlir that no per-tile vxpose appears).
        acc_ref[0, 0] = alpha * acc_ref[0, 0] + jax.lax.dot_general(
            e, feat, dimension_numbers=(((1,), (1,)), ((), ())),
            preferred_element_type=jnp.float32)
        m_ref[0, 0] = m_new

    if needs_mask:
        # Only the very last N tile contains padded columns: gate the
        # iota+where masking so every other tile pays zero VPU cost. The
        # padded tail is always < 128 <= tile_n, so this tile always has at
        # least one valid column (no fully-masked tile -> no -inf/NaN).
        is_pad_tile = jnp.logical_and(ci == n_chunks - 1,
                                      ni == tiles_per_chunk - 1)

        @pl.when(is_pad_tile)
        def _masked():
            col = jax.lax.broadcasted_iota(jnp.int32, s.shape, 1)
            update(jnp.where(col < valid_in_last_tile, s, -jnp.inf))

        @pl.when(jnp.logical_not(is_pad_tile))
        def _unmasked():
            update(s)
    else:
        update(s)


def sem_forward(x_nchw, w_feat, b_feat, w_atten, b_atten, *,
                tile_n=None, n_chunks=None, exp_in_bf16=None,
                extra_buffering=True):
    """x_nchw: (B, C, H, W) f32. Returns (B, c_feat, c_atten) f32."""
    B, C, H, W = x_nchw.shape
    N = H * W
    c_feat, c_atten = w_feat.shape[0], w_atten.shape[0]
    cf_p = _round_up(c_feat, 8)    # sublane-aligned so y[:cf_p]/[cf_p:] slices
    ca_p = _round_up(c_atten, 8)   # stay on the (8,128) layout grid

    gen = _tpu_generation()
    if exp_in_bf16 is None:
        exp_in_bf16 = gen >= 6     # v5e has no bf16 EUP/VPU path
    x_budget, vmem_limit = _vmem_budget_and_limit(gen)

    n_pad = _round_up(N, 128)
    needs_mask = n_pad != N
    # Pure metadata reshape (row-major contiguous) -- no HBM pass.
    x = x_nchw.reshape(B, C, N)
    if needs_mask:
        # Rare path only: pad the spatial tail to the 128-lane grid (still
        # f32, no dtype pass). Common case (N % 128 == 0) skips this.
        x = jnp.pad(x, ((0, 0), (0, 0), (0, n_pad - N)))

    if tile_n is None:
        tile_n = _pick_tile_n(n_pad, C, x_budget)
    assert n_pad % tile_n == 0 and tile_n % 128 == 0
    n_tiles = n_pad // tile_n

    if n_chunks is None:
        # v7x megacore: with B == 1 the batch "parallel" axis leaves one
        # TensorCore idle; split N into two parallel chunks whose partials
        # are combined in the tiny JAX epilogue. 1 TC chips keep 1 chunk.
        n_chunks = 2 if (gen >= 7 and B == 1 and n_tiles % 2 == 0) else 1
    if n_chunks < 1 or n_tiles % n_chunks != 0:
        n_chunks = 1
    tiles_per_chunk = n_tiles // n_chunks

    # Stacked, sublane-padded bf16 weights: ONE channel matmul per x tile.
    w = jnp.zeros((cf_p + ca_p, C), jnp.float32)
    w = w.at[:c_feat].set(w_feat.astype(jnp.float32))
    w = w.at[cf_p:cf_p + c_atten].set(w_atten.astype(jnp.float32))
    w = w.astype(jnp.bfloat16)
    # b_atten is a softmax no-op; b_feat is a rank-1 add on the tiny output
    # (softmax rows sum to 1), applied in the epilogue -> no bias in-kernel.

    valid_in_last_tile = tile_n - (n_pad - N)

    kernel = functools.partial(
        sem_kernel, cf_p=cf_p, n_chunks=n_chunks,
        tiles_per_chunk=tiles_per_chunk,
        valid_in_last_tile=valid_in_last_tile,
        needs_mask=needs_mask, exp_bf16=exp_in_bf16)

    deep = extra_buffering and (B * n_tiles >= 3)
    x_spec = _make_x_spec(C, tile_n, tiles_per_chunk, deep)

    m_part, l_part, acc_part = pl.pallas_call(
        kernel,
        out_shape=(
            jax.ShapeDtypeStruct((B, n_chunks, ca_p, 1), jnp.float32),
            jax.ShapeDtypeStruct((B, n_chunks, ca_p, 1), jnp.float32),
            jax.ShapeDtypeStruct((B, n_chunks, ca_p, cf_p), jnp.float32),
        ),
        grid_spec=pltpu.PrefetchScalarGridSpec(
            num_scalar_prefetch=0,
            grid=(B, n_chunks, tiles_per_chunk),
            in_specs=[
                x_spec,
                pl.BlockSpec((cf_p + ca_p, C), lambda bi, ci, ni: (0, 0)),
            ],
            out_specs=(
                pl.BlockSpec((1, 1, ca_p, 1), lambda bi, ci, ni: (bi, ci, 0, 0)),
                pl.BlockSpec((1, 1, ca_p, 1), lambda bi, ci, ni: (bi, ci, 0, 0)),
                pl.BlockSpec((1, 1, ca_p, cf_p),
                             lambda bi, ci, ni: (bi, ci, 0, 0)),
            ),
        ),
        compiler_params=pltpu.CompilerParams(
            dimension_semantics=("parallel", "parallel", "arbitrary"),
            vmem_limit_bytes=vmem_limit),
    )(x, w)

    # Tiny exact epilogue on (B, n_chunks, ca_p, cf_p): combine per-chunk
    # online-softmax partials, normalize in f32 (no approx reciprocal), add
    # the folded feat bias, crop sublane padding and transpose.
    m = m_part[..., 0]                                      # (B, NC, ca_p)
    m_g = jnp.max(m, axis=1, keepdims=True)                 # (B, 1, ca_p)
    scale = jnp.exp(m - m_g)                                # (B, NC, ca_p)
    l_g = jnp.sum(l_part[..., 0] * scale, axis=1)           # (B, ca_p)
    acc_g = jnp.sum(acc_part * scale[..., None], axis=1)    # (B, ca_p, cf_p)
    out_af = (acc_g[:, :c_atten, :c_feat] / l_g[:, :c_atten, None]
              + b_feat.astype(jnp.float32)[None, None, :])  # (B, ca, cf)
    return out_af.transpose(0, 2, 1)                        # (B, c_feat, c_atten)


def sem_reference(x_nchw, w_feat, b_feat, w_atten, b_atten):
    """Pure-JAX reference matching the PyTorch forward."""
    B, C, H, W = x_nchw.shape
    x = x_nchw.reshape(B, C, H * W)
    feat = jnp.einsum("fc,bcn->bfn", w_feat, x) + b_feat[None, :, None]
    atten = jnp.einsum("ac,bcn->ban", w_atten, x) + b_atten[None, :, None]
    atten = jax.nn.softmax(atten, axis=-1)
    return jnp.einsum("bfn,ban->bfa", feat, atten)


if __name__ == "__main__":
    B, C_IN, H, W = 2, 4, 16, 16
    C_FEAT, C_ATTEN = 8, 4

    key = jax.random.PRNGKey(0)
    kx, kwf, kbf, kwa, kba, kx2 = jax.random.split(key, 6)
    x = jax.random.normal(kx, (B, C_IN, H, W), dtype=jnp.float32)
    w_feat = jax.random.normal(kwf, (C_FEAT, C_IN), dtype=jnp.float32) * 0.1
    b_feat = jax.random.normal(kbf, (C_FEAT,), dtype=jnp.float32) * 0.1
    w_atten = jax.random.normal(kwa, (C_ATTEN, C_IN), dtype=jnp.float32) * 0.1
    b_atten = jax.random.normal(kba, (C_ATTEN,), dtype=jnp.float32) * 0.1

    ref = sem_reference(x, w_feat, b_feat, w_atten, b_atten)

    # Default tiling (single N tile at this small size).
    out = jax.block_until_ready(
        sem_forward(x, w_feat, b_feat, w_atten, b_atten))
    assert out.shape == (B, C_FEAT, C_ATTEN)
    assert jnp.allclose(out, ref, atol=3e-2, rtol=3e-2), "mismatch (default)"

    # Force the multi-tile online-softmax path (two 128-wide N tiles).
    out2 = jax.block_until_ready(
        sem_forward(x, w_feat, b_feat, w_atten, b_atten, tile_n=128))
    assert jnp.allclose(out2, ref, atol=3e-2, rtol=3e-2), "mismatch (tiled)"

    # Force the chunked (megacore-style) partials + epilogue-combine path.
    out3 = jax.block_until_ready(
        sem_forward(x, w_feat, b_feat, w_atten, b_atten,
                    tile_n=128, n_chunks=2))
    assert jnp.allclose(out3, ref, atol=3e-2, rtol=3e-2), "mismatch (chunked)"

    # Padded/masked path: N = 10*12 = 120 is not a multiple of 128.
    x_odd = jax.random.normal(kx2, (1, C_IN, 10, 12), dtype=jnp.float32)
    ref_odd = sem_reference(x_odd, w_feat, b_feat, w_atten, b_atten)
    out4 = jax.block_until_ready(
        sem_forward(x_odd, w_feat, b_feat, w_atten, b_atten))
    assert jnp.allclose(out4, ref_odd, atol=3e-2, rtol=3e-2), "mismatch (masked)"

    print("KERNEL_OK")
</pallas_src>

<mosaic_0001>
module attributes {stable_mosaic.version = 11 : i64} {
  func.func @sem_kernel(%arg0: i32, %arg1: i32, %arg2: i32, %arg3: memref<1x4x256xf32, #tpu.memory_space<vmem>>, %arg4: memref<16x4xbf16, #tpu.memory_space<vmem>>, %arg5: memref<1x1x8x1xf32, #tpu.memory_space<vmem>>, %arg6: memref<1x1x8x1xf32, #tpu.memory_space<vmem>>, %arg7: memref<1x1x8x8xf32, #tpu.memory_space<vmem>>) attributes {dimension_semantics = [#tpu.dimension_semantics<parallel>, #tpu.dimension_semantics<parallel>, #tpu.dimension_semantics<arbitrary>], iteration_bounds = array<i64: 2, 1, 1>, scalar_prefetch = 0 : i64, scratch_operands = 0 : i64, tpu.core_type = #tpu.core_type<tc>, window_params = [{transform_indices = @transform_0, window_bounds = array<i64: 1, 4, 256>}, {pipeline_mode = #tpu.pipeline_mode<synchronous>, transform_indices = @transform_1, window_bounds = array<i64: 16, 4>}, {transform_indices = @transform_2, window_bounds = array<i64: 1, 1, 8, 1>}, {transform_indices = @transform_3, window_bounds = array<i64: 1, 1, 8, 1>}, {transform_indices = @transform_4, window_bounds = array<i64: 1, 1, 8, 8>}]} {
    %c0_i32 = arith.constant 0 : i32
    %0 = arith.cmpi eq, %arg2, %c0_i32 : i32
    %1 = arith.extui %0 : i1 to i32
    %c0_i32_0 = arith.constant 0 : i32
    %2 = arith.cmpi ne, %1, %c0_i32_0 : i32
    scf.if %2 {
      %cst_32 = arith.constant 0xFF800000 : f32
      %44 = vector.broadcast %cst_32 : f32 to vector<1x1x8x1xf32>
      %c0_33 = arith.constant 0 : index
      %c0_34 = arith.constant 0 : index
      %c0_35 = arith.constant 0 : index
      %c0_36 = arith.constant 0 : index
      %45 = vector.load %arg5[%c0_33, %c0_34, %c0_35, %c0_36] : memref<1x1x8x1xf32, #tpu.memory_space<vmem>>, vector<1x1x8x1xf32>
      tpu.vector_store %arg5[%c0_33, %c0_34, %c0_35, %c0_36], %44 {strides = array<i32>} : memref<1x1x8x1xf32, #tpu.memory_space<vmem>>, vector<1x1x8x1xf32>,
      %cst_37 = arith.constant 0.000000e+00 : f32
      %46 = vector.broadcast %cst_37 : f32 to vector<1x1x8x1xf32>
      %c0_38 = arith.constant 0 : index
      %c0_39 = arith.constant 0 : index
      %c0_40 = arith.constant 0 : index
      %c0_41 = arith.constant 0 : index
      %47 = vector.load %arg6[%c0_38, %c0_39, %c0_40, %c0_41] : memref<1x1x8x1xf32, #tpu.memory_space<vmem>>, vector<1x1x8x1xf32>
      tpu.vector_store %arg6[%c0_38, %c0_39, %c0_40, %c0_41], %46 {strides = array<i32>} : memref<1x1x8x1xf32, #tpu.memory_space<vmem>>, vector<1x1x8x1xf32>,
      %cst_42 = arith.constant 0.000000e+00 : f32
      %48 = vector.broadcast %cst_42 : f32 to vector<1x1x8x8xf32>
      %c0_43 = arith.constant 0 : index
      %c0_44 = arith.constant 0 : index
      %c0_45 = arith.constant 0 : index
      %c0_46 = arith.constant 0 : index
      %49 = vector.load %arg7[%c0_43, %c0_44, %c0_45, %c0_46] : memref<1x1x8x8xf32, #tpu.memory_space<vmem>>, vector<1x1x8x8xf32>
      tpu.vector_store %arg7[%c0_43, %c0_44, %c0_45, %c0_46], %48 {strides = array<i32>} : memref<1x1x8x8xf32, #tpu.memory_space<vmem>>, vector<1x1x8x8xf32>,
    } else {
    }
    %c0 = arith.constant 0 : index
    %c0_1 = arith.constant 0 : index
    %c0_2 = arith.constant 0 : index
    %3 = vector.load %arg3[%c0, %c0_1, %c0_2] : memref<1x4x256xf32, #tpu.memory_space<vmem>>, vector<1x4x256xf32>
    %4 = vector.shape_cast %3 : vector<1x4x256xf32> to vector<4x256xf32>
    %5 = arith.truncf %4 : vector<4x256xf32> to vector<4x256xbf16>
    %c0_3 = arith.constant 0 : index
    %c0_4 = arith.constant 0 : index
    %6 = vector.load %arg4[%c0_3, %c0_4] : memref<16x4xbf16, #tpu.memory_space<vmem>>, vector<16x4xbf16>
    %cst = arith.constant dense<0.000000e+00> : vector<16x256xf32>
    %7 = tpu.matmul %6, %5, %cst {dimension_numbers = #tpu.dot_dimension_numbers<[1], [0], [0], [1], [0, 0, 1, 1], [], []>} : vector<16x4xbf16>, vector<4x256xbf16>, vector<16x256xf32> -> vector<16x256xf32>
    %8 = vector.extract_strided_slice %7 {offsets = [0, 0], sizes = [8, 256], strides = [1, 1]} : vector<16x256xf32> to vector<8x256xf32>
    %9 = arith.truncf %8 : vector<8x256xf32> to vector<8x256xbf16>
    %10 = vector.extract_strided_slice %7 {offsets = [8, 0], sizes = [8, 256], strides = [1, 1]} : vector<16x256xf32> to vector<8x256xf32>
    %c0_5 = arith.constant 0 : index
    %c0_6 = arith.constant 0 : index
    %c0_7 = arith.constant 0 : index
    %c0_8 = arith.constant 0 : index
    %11 = vector.load %arg5[%c0_5, %c0_6, %c0_7, %c0_8] : memref<1x1x8x1xf32, #tpu.memory_space<vmem>>, vector<1x1x8x1xf32>
    %12 = vector.shape_cast %11 : vector<1x1x8x1xf32> to vector<8x1xf32>
    %cst_9 = arith.constant dense<0xFF800000> : vector<8xf32>
    %13 = vector.multi_reduction <maximumf>, %10, %cst_9 [1] : vector<8x256xf32> to vector<8xf32>
    %14 = vector.shape_cast %13 : vector<8xf32> to vector<8x1xf32>
    %15 = arith.maximumf %12, %14 : vector<8x1xf32>
    %16 = arith.subf %12, %15 : vector<8x1xf32>
    %17 = math.exp %16 : vector<8x1xf32>
    %18 = vector.broadcast %15 : vector<8x1xf32> to vector<8x256xf32>
    %19 = arith.subf %10, %18 : vector<8x256xf32>
    %20 = arith.truncf %19 : vector<8x256xf32> to vector<8x256xbf16>
    %21 = math.exp %20 : vector<8x256xbf16>
    %c0_10 = arith.constant 0 : index
    %c0_11 = arith.constant 0 : index
    %c0_12 = arith.constant 0 : index
    %c0_13 = arith.constant 0 : index
    %22 = vector.load %arg6[%c0_10, %c0_11, %c0_12, %c0_13] : memref<1x1x8x1xf32, #tpu.memory_space<vmem>>, vector<1x1x8x1xf32>
    %23 = vector.shape_cast %22 : vector<1x1x8x1xf32> to vector<8x1xf32>
    %24 = arith.mulf %17, %23 : vector<8x1xf32>
    %25 = arith.extf %21 : vector<8x256xbf16> to vector<8x256xf32>
    %cst_14 = arith.constant dense<0.000000e+00> : vector<8xf32>
    %26 = vector.multi_reduction <add>, %25, %cst_14 [1] : vector<8x256xf32> to vector<8xf32>
    %27 = vector.shape_cast %26 : vector<8xf32> to vector<8x1xf32>
    %28 = arith.addf %24, %27 : vector<8x1xf32>
    %c0_15 = arith.constant 0 : index
    %c0_16 = arith.constant 0 : index
    %c0_17 = arith.constant 0 : index
    %c0_18 = arith.constant 0 : index
    %29 = vector.load %arg6[%c0_15, %c0_16, %c0_17, %c0_18] : memref<1x1x8x1xf32, #tpu.memory_space<vmem>>, vector<1x1x8x1xf32>
    %30 = vector.shape_cast %29 : vector<1x1x8x1xf32> to vector<8x1xf32>
    %31 = vector.shape_cast %28 : vector<8x1xf32> to vector<1x1x8x1xf32>
    tpu.vector_store %arg6[%c0_15, %c0_16, %c0_17, %c0_18], %31 {strides = array<i32>} : memref<1x1x8x1xf32, #tpu.memory_space<vmem>>, vector<1x1x8x1xf32>,
    %c0_19 = arith.constant 0 : index
    %c0_20 = arith.constant 0 : index
    %c0_21 = arith.constant 0 : index
    %c0_22 = arith.constant 0 : index
    %32 = vector.load %arg7[%c0_19, %c0_20, %c0_21, %c0_22] : memref<1x1x8x8xf32, #tpu.memory_space<vmem>>, vector<1x1x8x8xf32>
    %33 = vector.shape_cast %32 : vector<1x1x8x8xf32> to vector<8x8xf32>
    %34 = vector.broadcast %17 : vector<8x1xf32> to vector<8x8xf32>
    %35 = arith.mulf %34, %33 : vector<8x8xf32>
    %cst_23 = arith.constant dense<0.000000e+00> : vector<8x8xf32>
    %36 = tpu.matmul %21, %9, %cst_23 {dimension_numbers = #tpu.dot_dimension_numbers<[1], [1], [0], [0], [0, 0, 1, 0], [], []>} : vector<8x256xbf16>, vector<8x256xbf16>, vector<8x8xf32> -> vector<8x8xf32>
    %37 = arith.addf %35, %36 : vector<8x8xf32>
    %c0_24 = arith.constant 0 : index
    %c0_25 = arith.constant 0 : index
    %c0_26 = arith.constant 0 : index
    %c0_27 = arith.constant 0 : index
    %38 = vector.load %arg7[%c0_24, %c0_25, %c0_26, %c0_27] : memref<1x1x8x8xf32, #tpu.memory_space<vmem>>, vector<1x1x8x8xf32>
    %39 = vector.shape_cast %38 : vector<1x1x8x8xf32> to vector<8x8xf32>
    %40 = vector.shape_cast %37 : vector<8x8xf32> to vector<1x1x8x8xf32>
    tpu.vector_store %arg7[%c0_24, %c0_25, %c0_26, %c0_27], %40 {strides = array<i32>} : memref<1x1x8x8xf32, #tpu.memory_space<vmem>>, vector<1x1x8x8xf32>,
    %c0_28 = arith.constant 0 : index
    %c0_29 = arith.constant 0 : index
    %c0_30 = arith.constant 0 : index
    %c0_31 = arith.constant 0 : index
    %41 = vector.load %arg5[%c0_28, %c0_29, %c0_30, %c0_31] : memref<1x1x8x1xf32, #tpu.memory_space<vmem>>, vector<1x1x8x1xf32>
    %42 = vector.shape_cast %41 : vector<1x1x8x1xf32> to vector<8x1xf32>
    %43 = vector.shape_cast %15 : vector<8x1xf32> to vector<1x1x8x1xf32>
    tpu.vector_store %arg5[%c0_28, %c0_29, %c0_30, %c0_31], %43 {strides = array<i32>} : memref<1x1x8x1xf32, #tpu.memory_space<vmem>>, vector<1x1x8x1xf32>,
    return
  }
  func.func @transform_0(%arg0: i32, %arg1: i32, %arg2: i32) -> (i32, i32, i32) {
    %c1_i32 = arith.constant 1 : i32
    %0 = arith.muli %arg1, %c1_i32 : i32
    %1 = arith.addi %0, %arg2 : i32
    %c0_i32 = arith.constant 0 : i32
    %c0_i32_0 = arith.constant 0 : i32
    return %arg0, %c0_i32, %1 : i32, i32, i32
  }
  func.func @transform_1(%arg0: i32, %arg1: i32, %arg2: i32) -> (i32, i32) {
    %c0_i32 = arith.constant 0 : i32
    %c0_i32_0 = arith.constant 0 : i32
    %c0_i32_1 = arith.constant 0 : i32
    return %c0_i32, %c0_i32_0 : i32, i32
  }
  func.func @transform_2(%arg0: i32, %arg1: i32, %arg2: i32) -> (i32, i32, i32, i32) {
    %c0_i32 = arith.constant 0 : i32
    %c0_i32_0 = arith.constant 0 : i32
    %c0_i32_1 = arith.constant 0 : i32
    return %arg0, %arg1, %c0_i32, %c0_i32_0 : i32, i32, i32, i32
  }
  func.func @transform_3(%arg0: i32, %arg1: i32, %arg2: i32) -> (i32, i32, i32, i32) {
    %c0_i32 = arith.constant 0 : i32
    %c0_i32_0 = arith.constant 0 : i32
    %c0_i32_1 = arith.constant 0 : i32
    return %arg0, %arg1, %c0_i32, %c0_i32_0 : i32, i32, i32, i32
  }
  func.func @transform_4(%arg0: i32, %arg1: i32, %arg2: i32) -> (i32, i32, i32, i32) {
    %c0_i32 = arith.constant 0 : i32
    %c0_i32_0 = arith.constant 0 : i32
    %c0_i32_1 = arith.constant 0 : i32
    return %arg0, %arg1, %c0_i32, %c0_i32_0 : i32, i32, i32, i32
  }
}

</mosaic_0001>

<bundles_post_ra>
// kernel: tpu_custom_call.1
= control target key start
LH: loop header
LB: loop body
LE: loop exit
PB: predicated region body
PF: predicated region fallthrough
CT: control target
= control target key end

     0   :  { %10 = vsyncpa [#allocation3], 0  ;;  %s1064_s0 = inlined_call_operand.hbm [shape: f32[2,4,256], index: 0, kind: input, shape index: {}]   ;;  %s1065_s1 = inlined_call_operand.vmem [shape: bf16[16,4], index: 1, kind: input, shape index: {}]   ;;  %s1066_s2 = inlined_call_operand.vmem [shape: f32[2,1,8,1], index: 2, kind: output, shape index: {0}]   ;;  %s1067_s3 = inlined_call_operand.vmem [shape: f32[2,1,8,1], index: 3, kind: output, shape index: {1}]   ;;  %s1068_s4 = inlined_call_operand.hbm [shape: f32[2,1,8,8], index: 4, kind: output, shape index: {2}]  }
   0x1   :  { %12 = vsyncpa [#allocation3 + $0x1], 0 }
   0x2   :  { %13 = vsyncpa [#allocation4], 0 }
   0x3   :  { %15 = vsyncpa [#allocation4 + $0x1], 0  ;;  %s866_s15 = smov 0   ;;  %s868_s16 = smov 0  }
   0x4   :  { %s870_s17 = smov 0   ;;  %s872_s18 = smov 0  }
   0x5   :  { %s874_s19 = smov 0   ;;  %s876_s20 = smov 0  }
   0x6 LB: > { %s627_s21 = sadd.s32 4294967295, %s834_s20   ;;  %s628_s22 = sadd.s32 4294967294, %s834_s20   ;;  %s834_s20 = sphi %s876_s20, %s21_s20   ;;  %s830_s19 = sphi %s874_s19, %s1084_s19   ;;  %s826_s18 = sphi %s872_s18, %s1083_s18   ;;  %s822_s17 = sphi %s870_s17, %s1082_s17   ;;  %s818_s16 = sphi %s868_s16, %s1081_s16   ;;  %s814_s15 = sphi %s866_s15, %s1080_s15  }
   0x7   : > { %s40_s23 = sadd.s32 1, %s830_s19  ;;  %s51_s24 = sadd.s32 1, %s822_s17 }
   0x8   : > { %p42_p0 = scmp.ge.s32.totalorder %s40_s23, 2  ;;  %p58_p1 = scmp.ne.s32.totalorder %s822_s17, %s818_s16 }
   0x9   : > { %p59_p2 = scmp.eq.s32.totalorder %s834_s20, 0  ;;  %p64_p3 = scmp.ne.s32.totalorder %s818_s16, %s814_s15 }
   0xa   : > { %s1086_s23 = smov (%p42_p0, %s40_s23), 0  ;;  %p65_p5 = scmp.eq.s32.totalorder %s627_s21, 0 }
   0xb   : > { %p907_p4 = por %p59_p2, %p58_p1  ;;  %s46_s26 = ssub.s32 %s830_s19, %s1086_s23 }
   0xc   : > { %p167_p6 = scmp.eq.s32.totalorder %s627_s21, 1  ;;  %p49_p7 = scmp.eq.s32.totalorder %s46_s26, 0 }
   0xd   : > { %p913_p8 = por %p65_p5, %p64_p3  ;;  %p173_p10 = scmp.eq.s32.totalorder %s628_s22, 1 }
   0xe   : > { %p917_p9 = por %p167_p6, %p58_p1  ;;  %p659_p13 = scmp.lt.s32.totalorder %s834_s20, 2 }
   0xf   : > { %s922_s29 = scalar_select %p49_p7, %s822_s17, %s51_s24  }
  0x10   : > { %s1072_s28 = scalar_select %p917_p9, 1, 0 }
  0x11   : > { %p924_p11 = por %p173_p10, %p64_p3  ;;  %s196_s5 = sand.u32 1, %s822_s17  }
  0x12   : > { %s631_s6 = sshll.u32 %s196_s5, 3  ;;  %s646_s7 = sshll.u32 %s830_s19, 7 }
  0x13   : > { %s1073_s30 = scalar_select %p924_p11, 1, 0 }
  0x14   : > { %s935_s10 = scalar_lea.hbm %s1064_s0, %s646_s7  ;;  %s200_s11 = scalar_lea.vmem [#allocation2], %s631_s6 }
  0x15   : > { %s211_s12 = sshll.u32 %s200_s11, 4  ;;  %p941_p0 = pnand %p659_p13, %p907_p4  ;;  %s937_s12 = int_to_ptr.vmem [resolvable:$true] %s211_s12 }
  0x16   : > { %s197_s14 = scalar_lea.sflag [#allocation3], %s196_s5  ;;  %s722_s21 = scalar_lea.hbm %s935_s10, 128 }
  0x17   : > { %p723_p3 = scmp.ne.s32.totalorder %s935_s10, %s722_s21  ;;  %p724_p5 = pneg %p941_p0 }
  0x18   : > { %s727_s25 = scalar_lea.hbm %s1064_s0, 256  ;;  %p728_p4 = scmp.lt.u32.totalorder %s935_s10, %s1064_s0 }
  0x19   : > { %p725_p6 = pnand %p724_p5, %p723_p3  ;;  %p729_p10 = scmp.lt.u32.totalorder %s727_s25, %s722_s21 }
  0x1a   : > { %p731_p12 = scmp.lt.u32.totalorder %s722_s21, %s935_s10 }
  0x1b   : > { %p726_p7 = pneg %p725_p6  ;;  %p730_p13 = por %p729_p10, %p728_p4 }
  0x1d   : > { %p732_p1 = por %p731_p12, %p730_p13 }
  0x1f   : > { %p733_p2 = pnand %p732_p1, %p726_p7 }
  0x21   : > { %736 = shalt.err (!%p733_p2)
}
  0x22   : > { %s737_s5 = scalar_lea.vmem %s937_s12, 128  ;;  %s836_s7 = smov [#allocation2]  }
  0x23   : > { %p738_p3 = scmp.ne.s32.totalorder %s937_s12, %s737_s5  ;;  %s742_s8 = sshll.u32 %s836_s7, 4  ;;  %s743_s8 = int_to_ptr.vmem [resolvable:$false] %s742_s8 }
  0x24   : > { %s744_s9 = scalar_lea.vmem %s743_s8, 256  ;;  %p745_p9 = scmp.lt.s32.totalorder %s937_s12, %s743_s8 }
  0x25   : > { %p740_p6 = pnand %p738_p3, %p724_p5  ;;  %p746_p4 = scmp.lt.s32.totalorder %s744_s9, %s737_s5 }
  0x27   : > { %p741_p11 = pneg %p740_p6  ;;  %p747_p10 = por %p746_p4, %p745_p9 }
  0x29   : > { %p748_p12 = pnand %p747_p10, %p741_p11 }
  0x2b   : > { %751 = shalt.err (!%p748_p12)
}
  0x2c   : > { %654 = dma.hbm_to_vmem [thread:$0]  (!%p941_p0), %s935_s10, 128, %s937_s12, %s197_s14  }
  0x2d   : > { %p1075_p1 = scmp.lt.s32.totalorder %s834_s20, 3  ;;  %p1076_p2 = scmp.ge.s32.totalorder %s834_s20, 1 }
  0x2f   : > { %p217_p5 = pnand %p1076_p2, %p1075_p1 }
  0x30   : > { %s977_s11 = sand.u32 (!%p217_p5), 1, %s818_s16  }
  0x31   : > { %220 = sbr.rel (%p217_p5) target bundleno = 803 (0x323), region = 28  ;;  %s635_s21 = sshll.u32 (!%p217_p5), %s977_s11, 3 }
  0x32   : > { %s223_s22 = scalar_lea.sflag (!%p217_p5), [#allocation3], %s977_s11  ;;  %s226_s13 = scalar_lea.vmem (!%p217_p5), [#allocation2], %s635_s21 }
  0x38   : > { %805 = dma.done.wait (%p913_p8), %s223_s22, 128  }
  0x39   : > { %807 = vsyncadd (%p913_p8), %s223_s22, 4294967168  ;;  %v837_v0 = vmov 0   ;;  %v291_v1 = vld [vmem:[%s226_s13] sm:$0xff]  ;;  %vm308_vm0 = vcmask 1041408   ;;  %vm304_vm1 = vcmask 31744   ;;  %p267_p8 = scmp.lt.s32.totalorder %s826_s18, 1 }
  0x3a   : > { %347 = vmatprep.mubr.bf16.mxu0 %v837_v0  ;;  %712 = vset.pattern.permute.xlu0 %v837_v0  ;;  %v293_v2 = vcombine.high %v291_v1, %v291_v1  ;;  %v295_v3 = vpack.c.bf16 %v291_v1, %v291_v1  ;;  %v715_v6 = vld [vmem:[%s1065_s1] sm:$0xff]   ;;  %vm286_vm2 = vcmask 7168   ;;  %v838_v7 = vmov -inf   ;;  %s264_s8 = scalar_lea.vmem [#allocation5], %s635_s21  ;;  %s643_s9 = sshll.u32 %s826_s18, 7 }
  0x3b   : > { %713 = vset.pattern.permute.xlu1 %v837_v0  ;;  %s268_s27 = scalar_select %p267_p8, %s826_s18, 1  ;;  %v839_v15 = vmov 0.0   ;;  %vm289_vm3 = vcmask 64512  }
  0x3c   : > { %v296_v4 = vpack.c.bf16 %v293_v2, %v293_v2  ;;  %v310_v5 = vsel %vm308_vm0, %v295_v3, 0  ;;  %290 = vst.msk [vmem:[%s264_s8] sm:$0xff] %vm289_vm3, %v839_v15  ;;  %s479_s22 = sshll.u32 %s264_s8, 4  ;;  %s1014_s10 = scalar_lea.hbm %s1068_s4, %s643_s9  ;;  %s1016_s22 = int_to_ptr.vmem [resolvable:$true] %s479_s22 }
  0x3d   : > { %s637_s14 = sshll.u32 %s268_s27, 3  ;;  %s459_s18 = scalar_lea.sflag [#allocation4], %s977_s11 }
  0x3e   : > { %640 = vmatprep.subr.msk.bf16.mxu0 %vm308_vm0, %v296_v4  ;;  %s273_s26 = scalar_lea.vmem %s1066_s2, %s637_s14  ;;  %s999_s7 = scalar_lea.vmem %s1067_s3, %s637_s14 }
  0x3f   : > { %316 = vmatpush1.bf16.msra.mxu0 %v310_v5  ;;  %287 = vst.msk [vmem:[%s273_s26] sm:$0xff] %vm286_vm2, %v838_v7  ;;  %288 = vst.msk [vmem:[%s999_s7] sm:$0xff] %vm286_vm2, %v839_v15  ;;  %s752_s12 = scalar_lea.vmem %s1016_s22, 128  ;;  %p1077_p11 = scmp.ne.s32.totalorder %s1072_s28, 0 }
  0x40   : > { %p753_p9 = scmp.ne.s32.totalorder %s1016_s22, %s752_s12  ;;  %s840_s27 = smov [#allocation5]  }
  0x41   : > { %s756_s14 = sshll.u32 %s840_s27, 4  ;;  %s757_s14 = int_to_ptr.vmem [resolvable:$false] %s756_s14 }
  0x42   : > { %641 = vmatmul.mubr.msk.bf16.vlgmr.msra.gmra.mrb[0].mxu0 %vm304_vm1, %v715_v6  ;;  %p754_p0 = pnand %p753_p9, %p1077_p11  ;;  %s758_s24 = scalar_lea.vmem %s757_s14, 256 }
  0x43   : > { %v393_v38 = vld [vmem:[%s264_s8] sm:$0xff]  ;;  %p759_p13 = scmp.lt.s32.totalorder %s1016_s22, %s757_s14  ;;  %p760_p3 = scmp.lt.s32.totalorder %s758_s24, %s752_s12 }
  0x44   : > { %p755_p7 = pneg %p754_p0 }
  0x45   : > { %p761_p6 = por %p760_p3, %p759_p13 }
  0x46   : > { %v360_v16 = vld [vmem:[%s273_s26] sm:$0xff] }
  0x47   : > { %v383_v34 = vld [vmem:[%s999_s7] sm:$0xff]  ;;  %p762_p4 = pnand %p761_p6, %p755_p7 }
 0x115   : > { %v349_v8 = vpop.f32.mrb[0].mxu0 }
 0x116   : > { %v351_v9 = vpop.f32.mrb[1].mxu0  ;;  %v358_v12 = vpack.c.bf16 %v349_v8, %v349_v8 }
 0x117   : > { %v353_v10 = vpop.f32.mrb[2].mxu0  ;;  %v359_v11 = vpack.c.bf16 %v351_v9, %v351_v9 }
 0x118   : > { %v355_v13 = vpop.f32.mrb[3].mxu0 }
 0x119   : > { %400 = vmatprep.subr.bf16.mxu1 %v359_v11  ;;  %v361_v14 = vmax.f32 %v353_v10, %v355_v13 }
 0x11a   : > { %401 = vmatpush1.bf16.xpose.msra.mxu1 %v358_v12 }
 0x11b   : > { %362 = vmax.xlane.f32.xlu0 %v361_v14 }
 0x1a8   : > { %v363_v17 = vpop.xlane.xlu0 %362 }
 0x1a9   : > { %v364_v18 = vmax.f32 %v360_v16, %v363_v17 }
 0x1ab   : > { %v365_v19 = vsub.f32 %v360_v16, %v364_v18  ;;  %443 = vst.msk [vmem:[%s273_s26] sm:$0xff] %vm286_vm2, %v364_v18  ;;  %370 = vperm.xlu0 %712, %v364_v18  }
 0x1ad   : > { %v366_v32 = vmul.f32 1.442695, %v365_v19 }
 0x22a   : > { %v371_v20 = vpop.permute.xlu0 %370 }
 0x22b   : > { %v373_v21 = vsub.f32 %v353_v10, %v371_v20  ;;  %v374_v22 = vsub.f32 %v355_v13, %v371_v20 }
 0x22d   : > { %v375_v23 = vpack.c.bf16 %v373_v21, %v373_v21  ;;  %v376_v24 = vpack.c.bf16 %v374_v22, %v374_v22 }
 0x22f   : > { %v378_v25 = vmul.bf16 1069105081, %v375_v23  ;;  %v381_v26 = vmul.bf16 1069105081, %v376_v24 }
 0x231   : > { %716 = vpow.bf16 %v378_v25 }
 0x232   : > { %718 = vpow.bf16 %v381_v26 }
 0x233   : > { %720 = vpow2.f32 %v366_v32 }
 0x23c   : > { %v717_v27 = vpop.eup %716 }
 0x23d   : > { %v719_v28 = vpop.eup %718  ;;  %v385_v29 = vunpack.c.l.bf16 %v717_v27 }
 0x23e   : > { %432 = vmatprep.mubr.bf16.mxu1 %v719_v28  ;;  %v386_v30 = vunpack.c.l.bf16 %v719_v28  ;;  %v721_v33 = vpop.eup %720 }
 0x23f   : > { %433 = vmatmul.mubr.bf16.vlgmr.msra.gmra.mrb[0].mxu1 %v717_v27  ;;  %v384_v35 = vmul.f32 %v721_v33, %v383_v34 }
 0x240   : > { %v387_v31 = vadd.f32 %v386_v30, %v385_v29 }
 0x242   : > { %388 = vadd.xlane.f32.xlu1 %v387_v31 }
 0x253   : > { %396 = vperm.xlu1 %713, %v721_v33  }
 0x2cf   : > { %v389_v36 = vpop.xlane.xlu1 %388 }
 0x2d0   : > { %v390_v37 = vadd.f32 %v389_v36, %v384_v35 }
 0x2d2   : > { %392 = vst.msk [vmem:[%s999_s7] sm:$0xff] %vm286_vm2, %v390_v37 }
 0x2d3   : > { %v397_v39 = vpop.permute.xlu1 %396 }
 0x2d4   : > { %v399_v40 = vmul.f32 %v397_v39, %v393_v38 }
 0x312   : > { %v434_v41 = vpop.f32.mrb[0].mxu1 }
 0x313   : > { %v440_v42 = vadd.f32 %v434_v41, %v399_v40  ;;  %v436_v43 = vpop.f32.mrb[1].mxu1 }
 0x314   : > { %v437_v44 = vpop.f32.mrb[2].mxu1 }
 0x315   : > { %442 = vst.msk [vmem:[%s264_s8] sm:$0xff] %vm289_vm3, %v440_v42  ;;  %v438_v45 = vpop.f32.mrb[3].mxu1 }
 0x316   : > { %765 = shalt.err (!%p762_p4)
}
 0x317   : > { %s766_s11 = scalar_lea.hbm %s1014_s10, 128  ;;  %s770_s6 = scalar_lea.hbm %s1068_s4, 256 }
 0x318   : > { %p767_p10 = scmp.ne.s32.totalorder %s1014_s10, %s766_s11  ;;  %p771_p2 = scmp.lt.u32.totalorder %s1014_s10, %s1068_s4 }
 0x319   : > { %p772_p5 = scmp.lt.u32.totalorder %s770_s6, %s766_s11  ;;  %p774_p9 = scmp.lt.u32.totalorder %s766_s11, %s1014_s10 }
 0x31a   : > { %p768_p12 = pnand %p767_p10, %p1077_p11 }
 0x31b   : > { %p773_p8 = por %p772_p5, %p771_p2 }
 0x31c   : > { %p769_p1 = pneg %p768_p12 }
 0x31d   : > { %p775_p0 = por %p774_p9, %p773_p8 }
 0x31f   : > { %p776_p7 = pnand %p775_p0, %p769_p1 }
 0x321   : > { %779 = shalt.err (!%p776_p7)
}
 0x322   : > { %649 = dma.vmem_to_hbm [thread:$0]  (%p1077_p11), %s1016_s22, 128, %s1014_s10, %s459_s18  }
 0x323 PF: > { %s511_s8 = sand.u32 1, %s814_s15   ;;  %p1078_p13 = scmp.ne.s32.totalorder %s1073_s30, 0 }
 0x324   : > { %p1079_p3 = scmp.ge.s32.totalorder %s834_s20, 2  ;;  %s512_s9 = scalar_lea.sflag [#allocation4], %s511_s8 }
 0x326   : > { %p656_p6 = pnand %p1079_p3, %p1078_p13 }
 0x328   : > { %809 = dma.done.wait (!%p656_p6), %s512_s9, 128  }
 0x329   : > { %811 = vsyncadd (!%p656_p6), %s512_s9, 4294967168  ;;  %s21_s20 = sadd.s32 1, %s834_s20   ;;  %s1080_s15 = smov %s818_s16 }
 0x32a   : > { %p18_p4 = scmp.ge.s32.totalorder %s21_s20, 4   ;;  %s1081_s16 = smov %s822_s17 }
 0x32b   : > { %s1082_s17 = smov %s922_s29  ;;  %s1083_s18 = smov %s830_s19 }
 0x32c   : > { %s1084_s19 = smov %s1086_s23  ;;  %20 = sbr.rel (!%p18_p4) target bundleno = 6 (0x6), region = 101 }
 0x333   :  { %517 = vsyncpa [#allocation3], 1 }
 0x334   :  { %519 = vsyncpa [#allocation3 + $0x1], 1 }
 0x335   :  { %520 = vsyncpa [#allocation4], 1 }
 0x336   :  { %522 = vsyncpa [#allocation4 + $0x1], 1 }

</bundles_post_ra>
